<compile_context>
chip_gen: v7x
topology: tpu7x:2x2x1
jax: 0.10.0
libtpu: 0.0.40
codegen_flags: <defaults>
</compile_context>

<pallas_src>
import functools
import math

import numpy as np
import jax
import jax.numpy as jnp
from jax.experimental import pallas as pl
from jax.experimental.pallas import tpu as pltpu


def _gcn_kernel(x_ref, adj_ref, w1_ref, w2_ref, out_ref, *, negative_slope):
    """Fused 2-layer GCN for one batch tile.

    x_ref:   (TB, S, Fin)  bf16  VMEM
    adj_ref: (TB, S, S)    bf16  VMEM
    w1_ref:  (Fin, Hp)     bf16  VMEM (zero-padded Hid, resident across steps)
    w2_ref:  (Hp, Cp)      bf16  VMEM (zero-padded Hid/Cout, resident)
    out_ref: (TB, S, Cp)   f32   VMEM (padded; sliced to Cout outside)
    """
    TB, S, Fin = x_ref.shape
    Hp = w1_ref.shape[1]
    Cp = w2_ref.shape[1]

    x = x_ref[...]
    adj = adj_ref[...]
    w1 = w1_ref[...]
    w2 = w2_ref[...]

    # ---- layer 1: support = x @ W1 (batch folded into MXU M dim) ----------
    s1 = jnp.dot(x.reshape(TB * S, Fin), w1,
                 preferred_element_type=jnp.float32)              # (TB*S, Hp) f32
    s1 = s1.reshape(TB, S, Hp).astype(adj.dtype)
    h1 = jnp.einsum('bij,bjh->bih', adj, s1,
                    preferred_element_type=jnp.float32)           # (TB, S, Hp) f32
    # ReLU(LeakyReLU(x)) == ReLU(x) for positive slope -> single max.
    h1 = jnp.maximum(h1, 0.0)
    # TODO(synk): dropout (gc1 internal p=0.1 and GCN.forward F.dropout) is
    # identity here (eval/inference mode); training-mode dropout would need
    # pltpu.prng_seed / pltpu.prng_random_bits and cannot match torch RNG.

    # ---- layer 2: support = h1 @ W2 ; out = adj @ support ; LeakyReLU -----
    s2 = jnp.dot(h1.reshape(TB * S, Hp).astype(w2.dtype), w2,
                 preferred_element_type=jnp.float32)              # (TB*S, Cp) f32
    s2 = s2.reshape(TB, S, Cp).astype(adj.dtype)
    h2 = jnp.einsum('bij,bjc->bic', adj, s2,
                    preferred_element_type=jnp.float32)           # (TB, S, Cp) f32
    h2 = jnp.where(h2 >= 0, h2, negative_slope * h2)              # LeakyReLU(0.2)

    out_ref[...] = h2.astype(out_ref.dtype)


def gcn_forward(x, adj, w1, w2, *, negative_slope=0.2, batch_tile=None,
                compute_dtype=jnp.bfloat16):
    """x: (B, S, nfeat), adj: (B, S, S), w1: (nfeat, nhid), w2: (nhid, nclass)."""
    B, S, Fin = x.shape
    Hid = w1.shape[1]
    Cout = w2.shape[1]
    assert w2.shape[0] == Hid

    LANE = 128
    Hp = max(LANE, -(-Hid // LANE) * LANE)    # lane-dense hidden width
    Cp = max(LANE, -(-Cout // LANE) * LANE)   # lane-dense output width

    # Zero-pad weights; extra columns/rows contribute exactly 0 to the output.
    w1p = jnp.zeros((Fin, Hp), w1.dtype).at[:, :Hid].set(w1)
    w2p = jnp.zeros((Hp, Cp), w2.dtype).at[:Hid, :Cout].set(w2)

    # bf16 at the call boundary; matmuls accumulate f32, activations stay f32.
    xc = x.astype(compute_dtype)
    adjc = adj.astype(compute_dtype)
    w1c = w1p.astype(compute_dtype)
    w2c = w2p.astype(compute_dtype)

    TB = B if batch_tile is None else batch_tile
    assert B % TB == 0, "batch_tile must divide batch"
    grid = (B // TB,)

    flops = 2 * B * (S * Fin * Hid + S * S * Hid + S * Hid * Cout + S * S * Cout)
    bytes_accessed = (xc.size * xc.dtype.itemsize
                      + adjc.size * adjc.dtype.itemsize
                      + w1c.size * w1c.dtype.itemsize
                      + w2c.size * w2c.dtype.itemsize
                      + B * S * Cp * 4)
    cost = pl.CostEstimate(flops=flops, transcendentals=0,
                           bytes_accessed=bytes_accessed)

    kernel = functools.partial(_gcn_kernel, negative_slope=negative_slope)
    out_padded = pl.pallas_call(
        kernel,
        out_shape=jax.ShapeDtypeStruct((B, S, Cp), jnp.float32),
        grid=grid,
        in_specs=[
            pl.BlockSpec((TB, S, Fin), lambda b: (b, 0, 0)),
            pl.BlockSpec((TB, S, S), lambda b: (b, 0, 0)),
            pl.BlockSpec((Fin, Hp), lambda b: (0, 0)),     # weights resident
            pl.BlockSpec((Hp, Cp), lambda b: (0, 0)),      # weights resident
        ],
        out_specs=pl.BlockSpec((TB, S, Cp), lambda b: (b, 0, 0)),
        compiler_params=pltpu.CompilerParams(
            dimension_semantics=("parallel",),             # disjoint batch tiles
        ),
        cost_estimate=cost,
    )(xc, adjc, w1c, w2c)

    return out_padded[..., :Cout]


def _reference(x, adj, w1, w2, negative_slope=0.2):
    """Pure-JAX (f32) restatement of the PyTorch GCN forward (eval mode)."""
    def leaky(v):
        return jnp.where(v >= 0, v, negative_slope * v)

    h1 = leaky(jnp.matmul(adj, jnp.matmul(x, w1)))
    h1 = jnp.maximum(h1, 0.0)                    # F.relu
    out = leaky(jnp.matmul(adj, jnp.matmul(h1, w2)))
    return out


if __name__ == "__main__":
    key = jax.random.PRNGKey(0)
    B, S = 2, 16                     # batch, number of graph nodes
    nfeat, nhid, nclass = 32, 32, 8

    kx, ka, k1, k2 = jax.random.split(key, 4)
    x = jax.random.normal(kx, (B, S, nfeat), dtype=jnp.float32)

    # Symmetric, row-normalized adjacency (deterministic).
    a = jax.random.uniform(ka, (B, S, S), dtype=jnp.float32)
    adj = 0.5 * (a + jnp.transpose(a, (0, 2, 1)))
    adj = adj / jnp.sum(adj, axis=-1, keepdims=True)

    # Weights initialized like GraphConvolution.reset_parameters:
    # uniform(-1/sqrt(out_features), 1/sqrt(out_features)).
    stdv1 = 1.0 / math.sqrt(nhid)
    stdv2 = 1.0 / math.sqrt(nclass)
    w1 = jax.random.uniform(k1, (nfeat, nhid), jnp.float32, -stdv1, stdv1)
    w2 = jax.random.uniform(k2, (nhid, nclass), jnp.float32, -stdv2, stdv2)

    out = jax.jit(gcn_forward)(x, adj, w1, w2)
    out = jax.block_until_ready(out)

    ref = _reference(x, adj, w1, w2)
    # bf16 compute inputs with f32 accumulation -> loose-but-safe tolerance.
    np.testing.assert_allclose(np.asarray(out), np.asarray(ref),
                               rtol=2e-2, atol=2e-2)

    assert out.shape == (B, S, nclass)
    assert out.dtype == jnp.float32

    print("KERNEL_OK")
</pallas_src>

<mosaic_0001>
module attributes {stable_mosaic.version = 11 : i64} {
  func.func @_gcn_kernel(%arg0: i32, %arg1: memref<2x16x32xbf16, #tpu.memory_space<vmem>>, %arg2: memref<2x16x16xbf16, #tpu.memory_space<vmem>>, %arg3: memref<32x128xbf16, #tpu.memory_space<vmem>>, %arg4: memref<128x128xbf16, #tpu.memory_space<vmem>>, %arg5: memref<2x16x128xf32, #tpu.memory_space<vmem>>) attributes {dimension_semantics = [#tpu.dimension_semantics<parallel>], iteration_bounds = array<i64: 1>, scalar_prefetch = 0 : i64, scratch_operands = 0 : i64, tpu.core_type = #tpu.core_type<tc>, window_params = [{transform_indices = @transform_0, window_bounds = array<i64: 2, 16, 32>}, {transform_indices = @transform_1, window_bounds = array<i64: 2, 16, 16>}, {pipeline_mode = #tpu.pipeline_mode<synchronous>, transform_indices = @transform_2, window_bounds = array<i64: 32, 128>}, {pipeline_mode = #tpu.pipeline_mode<synchronous>, transform_indices = @transform_3, window_bounds = array<i64: 128, 128>}, {transform_indices = @transform_4, window_bounds = array<i64: 2, 16, 128>}]} {
    %c0 = arith.constant 0 : index
    %c0_0 = arith.constant 0 : index
    %c0_1 = arith.constant 0 : index
    %0 = vector.load %arg1[%c0, %c0_0, %c0_1] : memref<2x16x32xbf16, #tpu.memory_space<vmem>>, vector<2x16x32xbf16>
    %c0_2 = arith.constant 0 : index
    %c0_3 = arith.constant 0 : index
    %c0_4 = arith.constant 0 : index
    %1 = vector.load %arg2[%c0_2, %c0_3, %c0_4] : memref<2x16x16xbf16, #tpu.memory_space<vmem>>, vector<2x16x16xbf16>
    %c0_5 = arith.constant 0 : index
    %c0_6 = arith.constant 0 : index
    %2 = vector.load %arg3[%c0_5, %c0_6] : memref<32x128xbf16, #tpu.memory_space<vmem>>, vector<32x128xbf16>
    %c0_7 = arith.constant 0 : index
    %c0_8 = arith.constant 0 : index
    %3 = vector.load %arg4[%c0_7, %c0_8] : memref<128x128xbf16, #tpu.memory_space<vmem>>, vector<128x128xbf16>
    %4 = vector.shape_cast %0 : vector<2x16x32xbf16> to vector<32x32xbf16>
    %cst = arith.constant dense<0.000000e+00> : vector<32x128xf32>
    %5 = tpu.matmul %4, %2, %cst {dimension_numbers = #tpu.dot_dimension_numbers<[1], [0], [0], [1], [0, 0, 1, 1], [], []>} : vector<32x32xbf16>, vector<32x128xbf16>, vector<32x128xf32> -> vector<32x128xf32>
    %6 = vector.shape_cast %5 : vector<32x128xf32> to vector<2x16x128xf32>
    %7 = arith.truncf %6 : vector<2x16x128xf32> to vector<2x16x128xbf16>
    "tpu.trace_start"() <{level = 10 : i32, message = "bij,bjh->bih"}> : () -> ()
    %cst_9 = arith.constant dense<0.000000e+00> : vector<2x16x128xf32>
    %8 = tpu.matmul %1, %7, %cst_9 {dimension_numbers = #tpu.dot_dimension_numbers<[2], [1], [1], [2], [0, 0, 0, 1, 1, 2], [0], [0]>} : vector<2x16x16xbf16>, vector<2x16x128xbf16>, vector<2x16x128xf32> -> vector<2x16x128xf32>
    "tpu.trace_stop"() : () -> ()
    %cst_10 = arith.constant 0.000000e+00 : f32
    %9 = vector.broadcast %cst_10 : f32 to vector<2x16x128xf32>
    %10 = arith.maximumf %8, %9 : vector<2x16x128xf32>
    %11 = vector.shape_cast %10 : vector<2x16x128xf32> to vector<32x128xf32>
    %12 = arith.truncf %11 : vector<32x128xf32> to vector<32x128xbf16>
    %cst_11 = arith.constant dense<0.000000e+00> : vector<32x128xf32>
    %13 = tpu.matmul %12, %3, %cst_11 {dimension_numbers = #tpu.dot_dimension_numbers<[1], [0], [0], [1], [0, 0, 1, 1], [], []>} : vector<32x128xbf16>, vector<128x128xbf16>, vector<32x128xf32> -> vector<32x128xf32>
    %14 = vector.shape_cast %13 : vector<32x128xf32> to vector<2x16x128xf32>
    %15 = arith.truncf %14 : vector<2x16x128xf32> to vector<2x16x128xbf16>
    "tpu.trace_start"() <{level = 10 : i32, message = "bij,bjc->bic"}> : () -> ()
    %cst_12 = arith.constant dense<0.000000e+00> : vector<2x16x128xf32>
    %16 = tpu.matmul %1, %15, %cst_12 {dimension_numbers = #tpu.dot_dimension_numbers<[2], [1], [1], [2], [0, 0, 0, 1, 1, 2], [0], [0]>} : vector<2x16x16xbf16>, vector<2x16x128xbf16>, vector<2x16x128xf32> -> vector<2x16x128xf32>
    %cst_13 = arith.constant 0.000000e+00 : f32
    "tpu.trace_stop"() : () -> ()
    %17 = vector.broadcast %cst_13 : f32 to vector<2x16x128xf32>
    %18 = arith.cmpf oge, %16, %17 : vector<2x16x128xf32>
    %cst_14 = arith.constant 2.000000e-01 : f32
    %19 = vector.broadcast %cst_14 : f32 to vector<2x16x128xf32>
    %20 = arith.mulf %19, %16 : vector<2x16x128xf32>
    %21 = arith.select %18, %16, %20 : vector<2x16x128xi1>, vector<2x16x128xf32>
    %c0_15 = arith.constant 0 : index
    %c0_16 = arith.constant 0 : index
    %c0_17 = arith.constant 0 : index
    %22 = vector.load %arg5[%c0_15, %c0_16, %c0_17] : memref<2x16x128xf32, #tpu.memory_space<vmem>>, vector<2x16x128xf32>
    tpu.vector_store %arg5[%c0_15, %c0_16, %c0_17], %21 {strides = array<i32>} : memref<2x16x128xf32, #tpu.memory_space<vmem>>, vector<2x16x128xf32>,
    return
  }
  func.func @transform_0(%arg0: i32) -> (i32, i32, i32) {
    %c0_i32 = arith.constant 0 : i32
    %c0_i32_0 = arith.constant 0 : i32
    %c0_i32_1 = arith.constant 0 : i32
    return %arg0, %c0_i32, %c0_i32_0 : i32, i32, i32
  }
  func.func @transform_1(%arg0: i32) -> (i32, i32, i32) {
    %c0_i32 = arith.constant 0 : i32
    %c0_i32_0 = arith.constant 0 : i32
    %c0_i32_1 = arith.constant 0 : i32
    return %arg0, %c0_i32, %c0_i32_0 : i32, i32, i32
  }
  func.func @transform_2(%arg0: i32) -> (i32, i32) {
    %c0_i32 = arith.constant 0 : i32
    %c0_i32_0 = arith.constant 0 : i32
    %c0_i32_1 = arith.constant 0 : i32
    return %c0_i32, %c0_i32_0 : i32, i32
  }
  func.func @transform_3(%arg0: i32) -> (i32, i32) {
    %c0_i32 = arith.constant 0 : i32
    %c0_i32_0 = arith.constant 0 : i32
    %c0_i32_1 = arith.constant 0 : i32
    return %c0_i32, %c0_i32_0 : i32, i32
  }
  func.func @transform_4(%arg0: i32) -> (i32, i32, i32) {
    %c0_i32 = arith.constant 0 : i32
    %c0_i32_0 = arith.constant 0 : i32
    %c0_i32_1 = arith.constant 0 : i32
    return %arg0, %c0_i32, %c0_i32_0 : i32, i32, i32
  }
}

</mosaic_0001>

<bundles_post_ra>
// kernel: gcn_forward.1
= control target key start
LH: loop header
LB: loop body
LE: loop exit
PB: predicated region body
PF: predicated region fallthrough
CT: control target
= control target key end

     0   :  { %vm68_vm0 = vcmask 261120   ;;  %v542_v4 = vmov 0.0   ;;  %vm543_vm1 = vmmov 0   ;;  %vm131_vm2 = vcmask 130048   ;;  %s639_s2 = inlined_call_operand.vmem [shape: bf16[32,128], index: 2, kind: input, shape index: {}]   ;;  %s640_s0 = inlined_call_operand.vmem [shape: bf16[2,16,32], index: 0, kind: input, shape index: {}]   ;;  %s641_s1 = inlined_call_operand.vmem [shape: bf16[2,16,16], index: 1, kind: input, shape index: {}]   ;;  %s642_s3 = inlined_call_operand.vmem [shape: bf16[128,128], index: 3, kind: input, shape index: {}]   ;;  %s643_s4 = inlined_call_operand.vmem [shape: f32[2,16,128], index: 4, kind: output, shape index: {}]  }
   0x1   :  { %v528_v0 = vld [vmem:[%s639_s2] sm:$0xff]   ;;  %v529_v1 = vld [vmem:[%s639_s2 + $0x8] sm:$0xff]   ;;  %482 = vmatprep.subr.bf16.mxu1 %v542_v4  ;;  %484 = vmatprep.mubr.msk.bf16.mxu1 %vm543_vm1, %v542_v4  ;;  %v536_v7 = vld [vmem:[%s642_s3 + $0x10] sm:$0xff]  }
   0x2   :  { %474 = vmatprep.subr.bf16.mxu0 %v528_v0  ;;  %v530_v2 = vld [vmem:[%s640_s0] sm:$0xff]   ;;  %v531_v3 = vld [vmem:[%s640_s0 + $0x8] sm:$0xff]   ;;  %v537_v8 = vld [vmem:[%s642_s3 + $0x18] sm:$0xff]  }
   0x3   :  { %475 = vmatpush3.bf16.msra.mxu0 %v528_v0  ;;  %478 = vmatprep.mubr.msk.bf16.mxu0 %vm68_vm0, %v530_v2  ;;  %v534_v5 = vld [vmem:[%s642_s3] sm:$0xff]   ;;  %v535_v6 = vld [vmem:[%s642_s3 + $0x8] sm:$0xff]   ;;  %v540_v19 = vld [vmem:[%s642_s3 + $0x30] sm:$0xff]  }
   0x4   :  { %476 = vmatprep.subr.bf16.mxu0 %v529_v1  ;;  %v538_v9 = vld [vmem:[%s642_s3 + $0x20] sm:$0xff]   ;;  %v533_v17 = vld [vmem:[%s641_s1 + $0x8] sm:$0xff]   ;;  %v541_v20 = vld [vmem:[%s642_s3 + $0x38] sm:$0xff]  }
   0x5   :  { %v532_v16 = vld [vmem:[%s641_s1] sm:$0xff]   ;;  %v539_v18 = vld [vmem:[%s642_s3 + $0x28] sm:$0xff]  }
   0x7   :  { %477 = vmatpush3.bf16.msra.mxu0 %v529_v1 }
   0x8   :  { %494 = vmatprep.subr.bf16.mxu0 %v534_v5 }
   0xa   :  { %479 = vmatmul.mubr.msk.bf16.vlgmr.msra.gmra.mrb[0].mxu0 %vm68_vm0, %v531_v3 }
   0xb   :  { %495 = vmatpush3.bf16.msra.mxu0 %v534_v5 }
   0xc   :  { %496 = vmatprep.subr.bf16.mxu0 %v535_v6 }
   0xf   :  { %497 = vmatpush3.bf16.msra.mxu0 %v535_v6 }
  0x10   :  { %498 = vmatprep.subr.bf16.mxu0 %v536_v7 }
  0x13   :  { %499 = vmatpush3.bf16.msra.mxu0 %v536_v7 }
  0x14   :  { %500 = vmatprep.subr.bf16.mxu0 %v537_v8 }
  0x17   :  { %501 = vmatpush3.bf16.msra.mxu0 %v537_v8 }
  0x18   :  { %502 = vmatprep.subr.bf16.mxu0 %v538_v9 }
  0x1b   :  { %503 = vmatpush3.bf16.msra.mxu0 %v538_v9 }
  0x1c   :  { %504 = vmatprep.subr.bf16.mxu0 %v539_v18 }
  0x1f   :  { %505 = vmatpush3.bf16.msra.mxu0 %v539_v18 }
  0x20   :  { %506 = vmatprep.subr.bf16.mxu0 %v540_v19 }
  0x23   :  { %507 = vmatpush3.bf16.msra.mxu0 %v540_v19 }
  0x24   :  { %508 = vmatprep.subr.bf16.mxu0 %v541_v20 }
  0x27   :  { %509 = vmatpush3.bf16.msra.mxu0 %v541_v20 }
  0xdd   :  { %v480_v10 = vpop.f32.mrb[0].mxu0 }
  0xde   :  { %v109_v11 = vpop.f32.mrb[1].mxu0 }
  0xdf   :  { %v481_v12 = vpop.f32.mrb[2].mxu0 }
  0xe0   :  { %v125_v13 = vpack.c.bf16 %v481_v12, %v480_v10  ;;  %v112_v14 = vpop.f32.mrb[3].mxu0 }
  0xe1   :  { %v124_v15 = vpack.c.bf16 %v112_v14, %v109_v11 }
  0xe3   :  { %483 = vmatpush3.bf16.msra.mxu1 %v124_v15 }
  0xe4   :  { %488 = vmatprep.subr.bf16.mxu1 %v542_v4 }
  0xe6   :  { %485 = vmatmul.mubr.msk.bf16.vlgmr.msra.gmra.mrb[0].mxu1 %vm131_vm2, %v532_v16 }
  0xe7   :  { %489 = vmatpush3.bf16.msra.mxu1 %v125_v13  ;;  %490 = vmatprep.mubr.msk.bf16.mxu1 %vm543_vm1, %v542_v4 }
  0xe8   :  { %514 = vmatprep.subr.bf16.mxu1 %v542_v4 }
  0xee   :  { %491 = vmatmul.mubr.msk.bf16.vlgmr.msra.gmra.mrb[4].mxu1 %vm131_vm2, %v533_v17 }
  0xef   :  { %516 = vmatprep.mubr.msk.bf16.mxu1 %vm543_vm1, %v542_v4 }
 0x1b9   :  { %v169_v21 = vpop.f32.mrb[0].mxu1 }
 0x1ba   :  { %v486_v22 = vpop.f32.mrb[1].mxu1  ;;  %v225_v24 = vmax.f32 %v169_v21, 0.0 }
 0x1bb   :  { %v172_v23 = vpop.f32.mrb[2].mxu1 }
 0x1bc   :  { %v226_v25 = vmax.f32 %v172_v23, 0.0  ;;  %v487_v26 = vpop.f32.mrb[3].mxu1 }
 0x1be   :  { %v229_v27 = vpack.c.bf16 %v226_v25, %v225_v24 }
 0x1c0   :  { %510 = vmatprep.mubr.bf16.mxu0 %v229_v27 }
 0x1c1   :  { %v218_v28 = vpop.f32.mrb[4].mxu1 }
 0x1c2   :  { %v492_v29 = vpop.f32.mrb[5].mxu1  ;;  %v227_v31 = vmax.f32 %v218_v28, 0.0 }
 0x1c3   :  { %v221_v30 = vpop.f32.mrb[6].mxu1 }
 0x1c4   :  { %v228_v32 = vmax.f32 %v221_v30, 0.0  ;;  %v493_v33 = vpop.f32.mrb[7].mxu1 }
 0x1c6   :  { %v230_v34 = vpack.c.bf16 %v228_v32, %v227_v31 }
 0x1c8   :  { %511 = vmatmul.mubr.bf16.vlgmr.msra.gmra.mrb[4].mxu0 %v230_v34 }
 0x29b   :  { %v512_v35 = vpop.f32.mrb[4].mxu0 }
 0x29c   :  { %v313_v36 = vpop.f32.mrb[5].mxu0 }
 0x29d   :  { %v513_v37 = vpop.f32.mrb[6].mxu0 }
 0x29e   :  { %v329_v38 = vpack.c.bf16 %v513_v37, %v512_v35  ;;  %v316_v39 = vpop.f32.mrb[7].mxu0 }
 0x29f   :  { %v328_v40 = vpack.c.bf16 %v316_v39, %v313_v36 }
 0x2a1   :  { %515 = vmatpush3.bf16.msra.mxu1 %v328_v40 }
 0x2a2   :  { %520 = vmatprep.subr.bf16.mxu1 %v542_v4 }
 0x2a4   :  { %517 = vmatmul.mubr.msk.bf16.vlgmr.msra.gmra.mrb[8].mxu1 %vm131_vm2, %v532_v16 }
 0x2a5   :  { %521 = vmatpush3.bf16.msra.mxu1 %v329_v38  ;;  %522 = vmatprep.mubr.msk.bf16.mxu1 %vm543_vm1, %v542_v4 }
 0x2ac   :  { %523 = vmatmul.mubr.msk.bf16.vlgmr.msra.gmra.mrb[12].mxu1 %vm131_vm2, %v533_v17 }
 0x377   :  { %v364_v41 = vpop.f32.mrb[8].mxu1 }
 0x378   :  { %vm412_vm3 = vcmp.ge.f32.partialorder %v364_v41, 0.0  ;;  %v416_v42 = vmul.f32 0.2, %v364_v41  ;;  %v518_v43 = vpop.f32.mrb[9].mxu1 }
 0x379   :  { %v367_v44 = vpop.f32.mrb[10].mxu1 }
 0x37a   :  { %v420_v45 = vsel %vm412_vm3, %v364_v41, %v416_v42  ;;  %vm413_vm4 = vcmp.ge.f32.partialorder %v367_v44, 0.0  ;;  %v417_v46 = vmul.f32 0.2, %v367_v44  ;;  %v519_v47 = vpop.f32.mrb[11].mxu1 }
 0x37b   :  { %424 = vst [vmem:[%s643_s4] sm:$0xff] %v420_v45 }
 0x37c   :  { %v421_v48 = vsel %vm413_vm4, %v367_v44, %v417_v46 }
 0x37d   :  { %425 = vst [vmem:[%s643_s4 + $0x8] sm:$0xff] %v421_v48 }
 0x37f   :  { %v405_v49 = vpop.f32.mrb[12].mxu1 }
 0x380   :  { %vm414_vm5 = vcmp.ge.f32.partialorder %v405_v49, 0.0  ;;  %v418_v50 = vmul.f32 0.2, %v405_v49  ;;  %v524_v51 = vpop.f32.mrb[13].mxu1 }
 0x381   :  { %v408_v52 = vpop.f32.mrb[14].mxu1 }
 0x382   :  { %v422_v53 = vsel %vm414_vm5, %v405_v49, %v418_v50  ;;  %vm415_vm6 = vcmp.ge.f32.partialorder %v408_v52, 0.0  ;;  %v419_v54 = vmul.f32 0.2, %v408_v52  ;;  %v525_v55 = vpop.f32.mrb[15].mxu1 }
 0x383   :  { %426 = vst [vmem:[%s643_s4 + $0x10] sm:$0xff] %v422_v53 }
 0x384   :  { %v423_v56 = vsel %vm415_vm6, %v408_v52, %v419_v54 }
 0x385   :  { %427 = vst [vmem:[%s643_s4 + $0x18] sm:$0xff] %v423_v56 }

</bundles_post_ra>
